<compile_context>
chip_gen: v7x
topology: tpu7x:2x2x1
jax: 0.10.0
libtpu: 0.0.40
codegen_flags: <defaults>
</compile_context>

<pallas_src>
import math

import jax
import jax.numpy as jnp
from jax.experimental import pallas as pl
from jax.experimental.pallas import tpu as pltpu


def temporal_attention_kernel(hs_ref, w1_ref, w2t_ref, av_ref, aw_ref):
    # hs_ref:  [TB, T, H]  batch tile of hidden_states (native dtype)
    # w1_ref:  [H, H]      fc1.weight in its original [out, in] layout
    # w2t_ref: [2H, H]     fc2.weight.T (single fused matrix)
    # av_ref:  [TB, H]     attention_vector tile
    # aw_ref:  [TB, T]     attention_weights tile
    hs = hs_ref[...]
    TB, T, H = hs.shape

    h_t = hs[:, T - 1, :]                      # [TB, H]  last time step (native dtype)
    hs_f = hs.astype(jnp.float32)              # one upcast per tile (no-op for f32)

    # fc1 folded into h_t:
    #   score[b,t] = <fc1(hs[b,t]), h_t[b]> = <hs[b,t], h_t[b] @ W1>
    # This [TB,H]x[H,H] matmul and the fused fc2 below are the only MXU work.
    u = jax.lax.dot_general(
        h_t, w1_ref[...],
        dimension_numbers=(((1,), (0,)), ((), ())),
        preferred_element_type=jnp.float32,
    )                                          # [TB, H] f32 (kept in f32)

    # score: VPU broadcast-multiply + lane reduce over H (no tiny-K MXU dot).
    score = jnp.sum(hs_f * u[:, None, :], axis=-1)          # [TB, T] f32

    # softmax over the time axis (f32, exact divide — aw is a module output).
    m = jnp.max(score, axis=-1, keepdims=True)
    e = jnp.exp(score - m)
    aw = e / jnp.sum(e, axis=-1, keepdims=True)              # [TB, T] f32

    # context_vector: VPU broadcast-multiply + sublane reduce over T.
    ctx = jnp.sum(hs_f * aw[:, :, None], axis=1)             # [TB, H] f32

    # fc2(cat(ctx, h_t)): single fused [TB,2H] x [2H,H] MXU contraction.
    pre = jnp.concatenate([ctx, h_t.astype(jnp.float32)], axis=-1)   # [TB, 2H] f32
    av = jnp.tanh(
        jax.lax.dot_general(
            pre.astype(w2t_ref.dtype), w2t_ref[...],
            dimension_numbers=(((1,), (0,)), ((), ())),
            preferred_element_type=jnp.float32,
        )
    )                                                         # [TB, H] f32

    av_ref[...] = av.astype(av_ref.dtype)
    aw_ref[...] = aw.astype(aw_ref.dtype)


def _padded_bytes(rows, cols, itemsize):
    """VMEM footprint of a 2-D tile after (8, 128) layout padding."""
    return (-(-rows // 8) * 8) * (-(-cols // 128) * 128) * itemsize


def _tile_vmem_bytes(tb, T, H, itemsize):
    """Resident VMEM for one grid step, double-buffered (inputs + outputs + weights)."""
    hs = tb * _padded_bytes(T, H, itemsize)                  # hidden_states tile
    av = _padded_bytes(tb, H, itemsize)                      # attention_vector tile
    aw = _padded_bytes(tb, T, itemsize)                      # attention_weights tile
    w = _padded_bytes(H, H, itemsize) + _padded_bytes(2 * H, H, itemsize)
    return 2 * (hs + av + aw + w)                            # x2: pipeline double-buffer


def _vmem_capacity_bytes():
    try:
        cap = getattr(pltpu.get_tpu_info(), "vmem_capacity_bytes", None)
        if cap:
            return int(cap)
    except Exception:
        pass
    return 64 * 1024 * 1024   # conservative fallback = v7x physical VMEM


def _pick_batch_tile(B, T, H, itemsize, budget_bytes):
    """Largest layout-legal batch tile that fits the (padded, double-buffered)
    VMEM budget, preferring >=4 (then >=2) grid steps so the pipeline overlaps
    DMA with compute and both v7x TensorCores participate."""
    # Legal tiles: multiples of 8 that divide B (sublane-aligned output blocks),
    # plus B itself (block dim == full array dim is always legal).
    cands = [d for d in range(8, B, 8) if B % d == 0] + [B]
    fitting = [d for d in cands if _tile_vmem_bytes(d, T, H, itemsize) <= budget_bytes]
    if not fitting:
        fitting = [min(cands)]
    for min_steps in (4, 2, 1):
        pool = [d for d in fitting if B // d >= min_steps]
        if pool:
            return max(pool)
    return max(fitting)


def temporal_attention(hidden_states, fc1_w, fc2_w, *, batch_tile=None):
    """hidden_states: [B, T, H]; fc1_w: [H, H]; fc2_w: [H, 2H].
    Returns (attention_vector [B, H], attention_weights [B, T])."""
    B, T, H = hidden_states.shape
    dtype = hidden_states.dtype
    itemsize = jnp.dtype(dtype).itemsize

    w1 = fc1_w.astype(dtype)                       # [H, H]  (no transpose needed)
    w2_t = jnp.transpose(fc2_w).astype(dtype)      # [2H, H] fused fc2 weight

    cap = _vmem_capacity_bytes()
    vmem_limit = cap // 2                          # 32 MiB on v7x, 64 MiB on v5e/v6e
    if batch_tile is None:
        tb = _pick_batch_tile(B, T, H, itemsize,
                              budget_bytes=int(0.75 * vmem_limit))
    else:
        tb = batch_tile
    assert B % tb == 0, "batch_tile must divide the batch"
    assert tb % 8 == 0 or tb == B, "batch_tile must be a multiple of 8 or equal B"
    vmem_limit = int(min(cap - (8 << 20),
                         max(vmem_limit,
                             _tile_vmem_bytes(tb, T, H, itemsize) + (4 << 20))))
    grid = (B // tb,)

    av, aw = pl.pallas_call(
        temporal_attention_kernel,
        grid=grid,
        in_specs=[
            pl.BlockSpec((tb, T, H), lambda b: (b, 0, 0)),   # batch-tiled hidden_states
            pl.BlockSpec((H, H), lambda b: (0, 0)),          # fc1 weight (resident)
            pl.BlockSpec((2 * H, H), lambda b: (0, 0)),      # fused fc2 weight (resident)
        ],
        out_specs=(
            pl.BlockSpec((tb, H), lambda b: (b, 0)),
            pl.BlockSpec((tb, T), lambda b: (b, 0)),
        ),
        out_shape=(
            jax.ShapeDtypeStruct((B, H), dtype),
            jax.ShapeDtypeStruct((B, T), dtype),
        ),
        compiler_params=pltpu.CompilerParams(
            dimension_semantics=("parallel",),   # shards grid across TCs on v7x
            vmem_limit_bytes=vmem_limit,
        ),
    )(hidden_states, w1, w2_t)

    return av, aw


def temporal_attention_ref(hidden_states, fc1_w, fc2_w):
    """Pure-JAX reference mirroring the PyTorch module exactly."""
    hp = jax.lax.Precision.HIGHEST
    score_first = jnp.einsum("bth,kh->btk", hidden_states, fc1_w, precision=hp)
    h_t = hidden_states[:, -1, :]
    score = jnp.einsum("btk,bk->bt", score_first, h_t, precision=hp)
    aw = jax.nn.softmax(score, axis=1)
    ctx = jnp.einsum("bth,bt->bh", hidden_states, aw, precision=hp)
    pre = jnp.concatenate([ctx, h_t], axis=1)
    av = jnp.tanh(jnp.einsum("bc,hc->bh", pre, fc2_w, precision=hp))
    return av, aw


if __name__ == "__main__":
    B, T, H = 2, 8, 32
    key = jax.random.PRNGKey(0)
    k_x, k_w1, k_w2 = jax.random.split(key, 3)

    hidden_states = jax.random.normal(k_x, (B, T, H), dtype=jnp.float32)

    # Deterministic param init (Kaiming-uniform-style bounds like nn.Linear).
    bound1 = 1.0 / math.sqrt(H)
    bound2 = 1.0 / math.sqrt(2 * H)
    fc1_w = jax.random.uniform(k_w1, (H, H), minval=-bound1, maxval=bound1,
                               dtype=jnp.float32)
    fc2_w = jax.random.uniform(k_w2, (H, 2 * H), minval=-bound2, maxval=bound2,
                               dtype=jnp.float32)

    av, aw = temporal_attention(hidden_states, fc1_w, fc2_w)
    jax.block_until_ready((av, aw))

    av_ref, aw_ref = temporal_attention_ref(hidden_states, fc1_w, fc2_w)
    assert av.shape == (B, H) and aw.shape == (B, T)
    # Exact softmax divide now; remaining diffs are MXU f32 accumulation-order
    # effects vs the HIGHEST-precision reference einsums.
    assert jnp.allclose(av, av_ref, atol=2e-3, rtol=2e-3), \
        float(jnp.max(jnp.abs(av - av_ref)))
    assert jnp.allclose(aw, aw_ref, atol=2e-3, rtol=2e-3), \
        float(jnp.max(jnp.abs(aw - aw_ref)))

    print("KERNEL_OK")
</pallas_src>

<mosaic_0001>
module attributes {stable_mosaic.version = 11 : i64} {
  func.func @temporal_attention_kernel(%arg0: i32, %arg1: memref<2x8x32xf32, #tpu.memory_space<vmem>>, %arg2: memref<32x32xf32, #tpu.memory_space<vmem>>, %arg3: memref<64x32xf32, #tpu.memory_space<vmem>>, %arg4: memref<2x32xf32, #tpu.memory_space<vmem>>, %arg5: memref<2x8xf32, #tpu.memory_space<vmem>>) attributes {dimension_semantics = [#tpu.dimension_semantics<parallel>], iteration_bounds = array<i64: 1>, scalar_prefetch = 0 : i64, scratch_operands = 0 : i64, tpu.core_type = #tpu.core_type<tc>, window_params = [{transform_indices = @transform_0, window_bounds = array<i64: 2, 8, 32>}, {pipeline_mode = #tpu.pipeline_mode<synchronous>, transform_indices = @transform_1, window_bounds = array<i64: 32, 32>}, {pipeline_mode = #tpu.pipeline_mode<synchronous>, transform_indices = @transform_2, window_bounds = array<i64: 64, 32>}, {transform_indices = @transform_3, window_bounds = array<i64: 2, 32>}, {transform_indices = @transform_4, window_bounds = array<i64: 2, 8>}]} {
    %c0 = arith.constant 0 : index
    %c0_0 = arith.constant 0 : index
    %c0_1 = arith.constant 0 : index
    %0 = vector.load %arg1[%c0, %c0_0, %c0_1] : memref<2x8x32xf32, #tpu.memory_space<vmem>>, vector<2x8x32xf32>
    %1 = vector.extract_strided_slice %0 {offsets = [0, 7, 0], sizes = [2, 1, 32], strides = [1, 1, 1]} : vector<2x8x32xf32> to vector<2x1x32xf32>
    %2 = vector.shape_cast %1 : vector<2x1x32xf32> to vector<2x32xf32>
    %c0_2 = arith.constant 0 : index
    %c0_3 = arith.constant 0 : index
    %3 = vector.load %arg2[%c0_2, %c0_3] : memref<32x32xf32, #tpu.memory_space<vmem>>, vector<32x32xf32>
    %cst = arith.constant dense<0.000000e+00> : vector<2x32xf32>
    %4 = tpu.matmul %2, %3, %cst {dimension_numbers = #tpu.dot_dimension_numbers<[1], [0], [0], [1], [0, 0, 1, 1], [], []>} : vector<2x32xf32>, vector<32x32xf32>, vector<2x32xf32> -> vector<2x32xf32>
    %5 = vector.shape_cast %4 : vector<2x32xf32> to vector<2x1x32xf32>
    %6 = vector.broadcast %5 : vector<2x1x32xf32> to vector<2x8x32xf32>
    %7 = arith.mulf %0, %6 : vector<2x8x32xf32>
    %cst_4 = arith.constant dense<0.000000e+00> : vector<2x8xf32>
    %8 = vector.multi_reduction <add>, %7, %cst_4 [2] : vector<2x8x32xf32> to vector<2x8xf32>
    %cst_5 = arith.constant dense<0xFF800000> : vector<2xf32>
    %9 = vector.multi_reduction <maximumf>, %8, %cst_5 [1] : vector<2x8xf32> to vector<2xf32>
    %10 = vector.shape_cast %9 : vector<2xf32> to vector<2x1xf32>
    %11 = vector.broadcast %10 : vector<2x1xf32> to vector<2x8xf32>
    %12 = arith.subf %8, %11 : vector<2x8xf32>
    %13 = math.exp %12 : vector<2x8xf32>
    %cst_6 = arith.constant dense<0.000000e+00> : vector<2xf32>
    %14 = vector.multi_reduction <add>, %13, %cst_6 [1] : vector<2x8xf32> to vector<2xf32>
    %15 = vector.shape_cast %14 : vector<2xf32> to vector<2x1xf32>
    %16 = vector.broadcast %15 : vector<2x1xf32> to vector<2x8xf32>
    %17 = arith.divf %13, %16 : vector<2x8xf32>
    %18 = vector.shape_cast %17 : vector<2x8xf32> to vector<2x8x1xf32>
    %19 = vector.broadcast %18 : vector<2x8x1xf32> to vector<2x8x32xf32>
    %20 = arith.mulf %0, %19 : vector<2x8x32xf32>
    %cst_7 = arith.constant dense<0.000000e+00> : vector<2x32xf32>
    %21 = vector.multi_reduction <add>, %20, %cst_7 [1] : vector<2x8x32xf32> to vector<2x32xf32>
    %22 = tpu.concatenate %21, %2 in 1 : vector<2x32xf32>, vector<2x32xf32> -> vector<2x64xf32>
    %c0_8 = arith.constant 0 : index
    %c0_9 = arith.constant 0 : index
    %23 = vector.load %arg3[%c0_8, %c0_9] : memref<64x32xf32, #tpu.memory_space<vmem>>, vector<64x32xf32>
    %cst_10 = arith.constant dense<0.000000e+00> : vector<2x32xf32>
    %24 = tpu.matmul %22, %23, %cst_10 {dimension_numbers = #tpu.dot_dimension_numbers<[1], [0], [0], [1], [0, 0, 1, 1], [], []>} : vector<2x64xf32>, vector<64x32xf32>, vector<2x32xf32> -> vector<2x32xf32>
    %25 = math.tanh %24 : vector<2x32xf32>
    %c0_11 = arith.constant 0 : index
    %c0_12 = arith.constant 0 : index
    %26 = vector.load %arg4[%c0_11, %c0_12] : memref<2x32xf32, #tpu.memory_space<vmem>>, vector<2x32xf32>
    tpu.vector_store %arg4[%c0_11, %c0_12], %25 {strides = array<i32>} : memref<2x32xf32, #tpu.memory_space<vmem>>, vector<2x32xf32>,
    %c0_13 = arith.constant 0 : index
    %c0_14 = arith.constant 0 : index
    %27 = vector.load %arg5[%c0_13, %c0_14] : memref<2x8xf32, #tpu.memory_space<vmem>>, vector<2x8xf32>
    tpu.vector_store %arg5[%c0_13, %c0_14], %17 {strides = array<i32>} : memref<2x8xf32, #tpu.memory_space<vmem>>, vector<2x8xf32>,
    return
  }
  func.func @transform_0(%arg0: i32) -> (i32, i32, i32) {
    %c0_i32 = arith.constant 0 : i32
    %c0_i32_0 = arith.constant 0 : i32
    %c0_i32_1 = arith.constant 0 : i32
    return %arg0, %c0_i32, %c0_i32_0 : i32, i32, i32
  }
  func.func @transform_1(%arg0: i32) -> (i32, i32) {
    %c0_i32 = arith.constant 0 : i32
    %c0_i32_0 = arith.constant 0 : i32
    %c0_i32_1 = arith.constant 0 : i32
    return %c0_i32, %c0_i32_0 : i32, i32
  }
  func.func @transform_2(%arg0: i32) -> (i32, i32) {
    %c0_i32 = arith.constant 0 : i32
    %c0_i32_0 = arith.constant 0 : i32
    %c0_i32_1 = arith.constant 0 : i32
    return %c0_i32, %c0_i32_0 : i32, i32
  }
  func.func @transform_3(%arg0: i32) -> (i32, i32) {
    %c0_i32 = arith.constant 0 : i32
    %c0_i32_0 = arith.constant 0 : i32
    return %arg0, %c0_i32 : i32, i32
  }
  func.func @transform_4(%arg0: i32) -> (i32, i32) {
    %c0_i32 = arith.constant 0 : i32
    %c0_i32_0 = arith.constant 0 : i32
    return %arg0, %c0_i32 : i32, i32
  }
}

</mosaic_0001>

<bundles_post_ra>
// kernel: tpu_custom_call.1
= control target key start
LH: loop header
LB: loop body
LE: loop exit
PB: predicated region body
PF: predicated region fallthrough
CT: control target
= control target key end

     0   :  { %10 = vsyncpa [#allocation3], 0  ;;  %v505_v3 = vmov 0.0|0.0   ;;  %vm506_vm0 = vmmov 0   ;;  %v507_v6 = vmov 0.0   ;;  %s642_s0 = inlined_call_operand.vmem [shape: f32[2,8,32], index: 0, kind: input, shape index: {}]   ;;  %s643_s1 = inlined_call_operand.vmem [shape: f32[32,32], index: 1, kind: input, shape index: {}]   ;;  %s644_s2 = inlined_call_operand.vmem [shape: f32[64,32], index: 2, kind: input, shape index: {}]   ;;  %s645_s3 = inlined_call_operand.hbm [shape: f32[2,32], index: 3, kind: output, shape index: {0}]   ;;  %s646_s4 = inlined_call_operand.hbm [shape: f32[2,8], index: 4, kind: output, shape index: {1}]  }
   0x1   :  { %v20_v0 = vld [vmem:[%s643_s1] sm:$0xff]  ;;  %v21_v1 = vld [vmem:[%s643_s1 + $0x8] sm:$0xff]  ;;  %v22_v2 = vld [vmem:[%s643_s1 + $0x10] sm:$0xff]  ;;  %419 = vmatprep.subr.bf16.mxu0 %v505_v3  ;;  %397 = vmatprep.mubr.msk.f32.mxu0 %vm506_vm0, %v507_v6 }
   0x2   :  { %v420_v4 = vpack.c.bf16 %v21_v1, %v20_v0  ;;  %v23_v5 = vld [vmem:[%s643_s1 + $0x18] sm:$0xff]  ;;  %v554_v7 = vld [vmem:[%s642_s0] sm:$0xff]  ;;  %v559_v8 = vld [vmem:[%s642_s0 + $0x8] sm:$0xff]  ;;  %425 = vmatprep.subr.bf16.mxu1 %v505_v3  ;;  %416 = vmatprep.mubr.msk.f32.mxu1 %vm506_vm0, %v507_v6 }
   0x3   :  { %11 = vsyncpa [#allocation5], 0  ;;  %v423_v9 = vpack.c.bf16 %v23_v5, %v22_v2  ;;  %v26_v10 = vrot.slane %v554_v7, 7  ;;  %v27_v11 = vrot.slane %v559_v8, 6  ;;  %vm28_vm1 = vcmask 1041409   ;;  %s510_s0 = smov 32  }
   0x4   :  { %421 = vmatpush3.bf16.msra.mxu0 %v420_v4  ;;  %vm30_vm2 = vcmask 261120   ;;  %v508_v13 = vmov 1966171168   ;;  %v107_v15 = vlaneseq  ;;  %vm158_vm3 = vcmask 58368   ;;  %v249_v0 = vld [vmem:[%s644_s2] sm:$0xff]  ;;  %v250_v1 = vld [vmem:[%s644_s2 + $0x8] sm:$0xff] }
   0x5   :  { %422 = vmatprep.subr.bf16.mxu0 %v505_v3  ;;  %v29_v12 = vsel %vm28_vm1, %v27_v11, %v26_v10  ;;  %v105_v14 = vunpack.c.l.s4 %v508_v13  ;;  %v509_v40 = vmov 0   ;;  %v426_v2 = vpack.c.bf16 %v250_v1, %v249_v0  ;;  %v251_v4 = vld [vmem:[%s644_s2 + $0x10] sm:$0xff]  ;;  %v252_v5 = vld [vmem:[%s644_s2 + $0x18] sm:$0xff]  ;;  %v254_v10 = vld [vmem:[%s644_s2 + $0x28] sm:$0xff] }
   0x6   :  { %v108_v17 = vshrl.u32 %v107_v15, 7  ;;  %v147_v32 = vand.u32 127, %v107_v15  ;;  %446 = vset.pattern.permute.xlu0 %v509_v40  ;;  %445 = vset.pattern.permute.xlu1 %v509_v40  ;;  %v429_v6 = vpack.c.bf16 %v252_v5, %v251_v4  ;;  %v256_v13 = vld [vmem:[%s644_s2 + $0x38] sm:$0xff]  ;;  %vm257_vm4 = vcmask 523264  }
   0x7   :  { %v106_v16 = vunpack.c.0.s8 %v105_v14  ;;  %427 = vmatpush3.bf16.msra.mxu1 %v426_v2 }
   0x8   :  { %424 = vmatpush3.bf16.msra.mxu0 %v423_v9  ;;  %v128_v22 = vsub.s32 0, %v108_v17  ;;  %v571_v34 = vsub.s32 %v147_v32, %v108_v17  ;;  %v169_v41 = vsub.s32 1, %v108_v17  ;;  %428 = vmatprep.subr.bf16.mxu1 %v505_v3  ;;  %v253_v9 = vld [vmem:[%s644_s2 + $0x20] sm:$0xff] }
   0x9   :  { %v109_v18 = vsub.s32 %v106_v16, %v108_v17  ;;  %v432_v11 = vpack.c.bf16 %v254_v10, %v253_v9 }
   0xb   :  { %398 = vmatmul.mubr.msk.f32.vlgmr.msra.gmra.mrb[0].mxu0 %vm30_vm2, %v29_v12  ;;  %430 = vmatpush3.bf16.msra.mxu1 %v429_v6 }
   0xc   :  { %431 = vmatprep.subr.bf16.mxu1 %v505_v3 }
   0xf   :  { %433 = vmatpush3.bf16.msra.mxu1 %v432_v11 }
  0x10   :  { %434 = vmatprep.subr.bf16.mxu1 %v505_v3 }
  0xde   :  { %v99_v19 = vpop.f32.mrb[0].mxu0 }
  0xdf   :  { %v110_v20 = vrot.slane %v99_v19, %v109_v18  ;;  %v399_v21 = vpop.f32.mrb[1].mxu0 }
  0xe1   :  { %v111_v23 = vcombine.high %v110_v20, %v110_v20  ;;  %v118_v24 = vrot.slane %v110_v20, %v109_v18 }
  0xe3   :  { %v125_v25 = vrot.slane %v111_v23, %v109_v18  ;;  %v129_v26 = vrot.slane %v118_v24, %v128_v22 }
  0xe5   :  { %v136_v27 = vmul.f32 %v129_v26, %v554_v7  ;;  %v133_v28 = vrot.slane %v125_v25, %v128_v22 }
  0xe7   :  { %v138_v29 = vsel %vm30_vm2, %v136_v27, 0.0  ;;  %v137_v30 = vmul.f32 %v133_v28, %v559_v8 }
  0xe8   :  { %139 = vadd.xlane.f32.xlu0 %v138_v29 }
  0xe9   :  { %v141_v31 = vsel %vm30_vm2, %v137_v30, 0.0 }
  0xec   :  { %142 = vadd.xlane.f32.xlu0 %v141_v31 }
 0x175   :  { %v140_v33 = vpop.xlane.xlu0 %139 }
 0x176   :  { %v151_v36 = vrot.slane %v140_v33, %v571_v34 }
 0x179   :  { %v143_v35 = vpop.xlane.xlu0 %142 }
 0x17a   :  { %v155_v37 = vrot.slane %v143_v35, %v571_v34 }
 0x17c   :  { %v156_v38 = vsel %vm28_vm1, %v155_v37, %v151_v36 }
 0x17d   :  { %v159_v39 = vsel %vm158_vm3, %v156_v38, -inf }
 0x17e   :  { %160 = vmax.xlane.f32.xlu1 %v159_v39 }
 0x20b   :  { %v161_v42 = vpop.xlane.xlu1 %160 }
 0x20c   :  { %v166_v43 = vrot.slane %v161_v42, %v128_v22  ;;  %v170_v44 = vrot.slane %v161_v42, %v169_v41 }
 0x20e   :  { %v173_v45 = vsub.f32 %v140_v33, %v166_v43  ;;  %v174_v46 = vsub.f32 %v143_v35, %v170_v44 }
 0x210   :  { %v175_v47 = vmul.f32 1.442695, %v173_v45  ;;  %v177_v48 = vmul.f32 1.442695, %v174_v46 }
 0x212   :  { %447 = vpow2.f32 %v175_v47 }
 0x213   :  { %449 = vpow2.f32 %v177_v48 }
 0x21c   :  { %v448_v49 = vpop.eup %447 }
 0x21d   :  { %v450_v50 = vpop.eup %449  ;;  %182 = vperm.xlu1 %445, %v448_v49  }
 0x21e   :  { %185 = vperm.xlu0 %446, %v450_v50  }
 0x29c   :  { %v183_v51 = vpop.permute.xlu1 %182 }
 0x29d   :  { %v186_v52 = vpop.permute.xlu0 %185  ;;  %v190_v53 = vrot.slane %v183_v51, %v571_v34 }
 0x29e   :  { %v194_v54 = vrot.slane %v186_v52, %v571_v34 }
 0x2a0   :  { %v195_v55 = vsel %vm28_vm1, %v194_v54, %v190_v53 }
 0x2a1   :  { %v197_v56 = vsel %vm158_vm3, %v195_v55, 0.0 }
 0x2a2   :  { %198 = vadd.xlane.f32.xlu1 %v197_v56 }
 0x2b3   :  { %245 = vrot.lane.b32.xlu1 %v29_v12, %s510_s0  ;;  %v255_v12 = vld [vmem:[%s644_s2 + $0x30] sm:$0xff]  ;;  %s511_s2 = smov [#allocation4]  }
 0x2b4   :  { %v435_v14 = vpack.c.bf16 %v256_v13, %v255_v12  ;;  %s361_s16 = sshll.u32 %s511_s2, 4  ;;  %s362_s16 = int_to_ptr.vmem [resolvable:$true] %s361_s16 }
 0x2b5   :  { %s457_s17 = scalar_lea.vmem %s362_s16, 32  ;;  %p462_p1 = scmp.lt.s32.totalorder %s362_s16, %s362_s16 }
 0x2b6   :  { %436 = vmatpush3.bf16.msra.mxu1 %v435_v14  ;;  %p458_p0 = scmp.ne.s32.totalorder %s362_s16, %s457_s17  ;;  %p463_p2 = scmp.lt.s32.totalorder %s457_s17, %s457_s17 }
 0x2b8   :  { %p464_p3 = por %p463_p2, %p462_p1 }
 0x2ba   :  { %p465_p4 = pnand %p464_p3, %p458_p0 }
 0x32f   :  { %v199_v57 = vpop.xlane.xlu1 %198 }
 0x330   :  { %v204_v58 = vrot.slane %v199_v57, %v128_v22  ;;  %v208_v59 = vrot.slane %v199_v57, %v169_v41 }
 0x332   :  { %451 = vrcp.f32 %v204_v58 }
 0x333   :  { %453 = vrcp.f32 %v208_v59 }
 0x33c   :  { %v452_v60 = vpop.eup %451 }
 0x33d   :  { %v212_v61 = vmul.f32 %v452_v60, %v448_v49  ;;  %v454_v62 = vpop.eup %453 }
 0x33e   :  { %v214_v63 = vmul.f32 %v454_v62, %v450_v50 }
 0x33f   :  { %217 = vperm.xlu0 %446, %v212_v61  }
 0x343   :  { %222 = vperm.xlu0 %446, %v214_v63  }
 0x3be   :  { %v218_v15 = vpop.permute.xlu0 %217 }
 0x3bf   :  { %v225_v16 = vmul.f32 %v218_v15, %v554_v7  ;;  %v337_v20 = vrot.slane %v218_v15, %v571_v34 }
 0x3c1   :  { %v227_v17 = vsel %vm30_vm2, %v225_v16, 0.0 }
 0x3c2   :  { %v228_v18 = vrot.slane %v227_v17, 4  ;;  %v223_v19 = vpop.permute.xlu0 %222 }
 0x3c3   :  { %v226_v3 = vmul.f32 %v223_v19, %v559_v8  ;;  %v341_v21 = vrot.slane %v223_v19, %v571_v34  ;;  %v246_v8 = vpop.permute.xlu1 %245 }
 0x3c4   :  { %v229_v22 = vadd.f32 %v228_v18, %v227_v17 }
 0x3c5   :  { %v234_v23 = vsel %vm30_vm2, %v226_v3, 0.0  ;;  %v342_v24 = vsel %vm28_vm1, %v341_v21, %v337_v20 }
 0x3c6   :  { %v230_v25 = vrot.slane %v229_v22, 2  ;;  %v235_v26 = vrot.slane %v234_v23, 4  ;;  %344 = vst.msk [vmem:[#allocation4] sm:$0x3] %vm158_vm3, %v342_v24 }
 0x3c8   :  { %v231_v7 = vadd.f32 %v230_v25, %v229_v22  ;;  %v236_v27 = vadd.f32 %v235_v26, %v234_v23 }
 0x3ca   :  { %v237_v28 = vrot.slane %v236_v27, 2  ;;  %v232_v29 = vrot.slane %v231_v7, 1 }
 0x3cc   :  { %v238_v30 = vadd.f32 %v237_v28, %v236_v27  ;;  %v233_v33 = vadd.f32 %v232_v29, %v231_v7 }
 0x3ce   :  { %v239_v31 = vrot.slane %v238_v30, 1 }
 0x3d0   :  { %v240_v32 = vadd.f32 %v239_v31, %v238_v30 }
 0x3d2   :  { %v243_v34 = vsel %vm28_vm1, %v240_v32, %v233_v33 }
 0x3d3   :  { %v248_v35 = vsel %vm30_vm2, %v243_v34, %v246_v8 }
 0x3d4   :  { %417 = vmatmul.mubr.msk.f32.vlgmr.msra.gmra.mrb[0].mxu1 %vm257_vm4, %v248_v35 }
 0x3d5   :  { %468 = shalt.err (!%p465_p4)
}
 0x3d6   :  { %s469_s20 = scalar_lea.hbm %s646_s4, 32 }
 0x3d7   :  { %p470_p5 = scmp.ne.s32.totalorder %s646_s4, %s469_s20  ;;  %p473_p6 = scmp.lt.u32.totalorder %s469_s20, %s646_s4 }
 0x3d9   :  { %p475_p7 = pnand %p473_p6, %p470_p5 }
 0x3db   :  { %478 = shalt.err (!%p475_p7)
}
 0x3dc   :  { %364 = dma.vmem_to_hbm [thread:$0]  %s362_s16, 32, %s646_s4, [#allocation5]   ;;  %vm332_vm5 = vcmask 254976  }
 0x3dd   :  { %s512_s0 = smov [#allocation2]  }
 0x3de   :  { %s351_s1 = sshll.u32 %s512_s0, 4  ;;  %s352_s1 = int_to_ptr.vmem [resolvable:$true] %s351_s1 }
 0x3df   :  { %s479_s27 = scalar_lea.vmem %s352_s1, 32  ;;  %p484_p9 = scmp.lt.s32.totalorder %s352_s1, %s352_s1 }
 0x3e0   :  { %p480_p8 = scmp.ne.s32.totalorder %s352_s1, %s479_s27  ;;  %p485_p10 = scmp.lt.s32.totalorder %s479_s27, %s479_s27 }
 0x3e2   :  { %p486_p11 = por %p485_p10, %p484_p9 }
 0x3e4   :  { %p487_p12 = pnand %p486_p11, %p480_p8 }
 0x4a7   :  { %v327_v36 = vpop.f32.mrb[0].mxu1 }
 0x4a8   :  { %455 = vtanh.f32 %v327_v36  ;;  %v418_v37 = vpop.f32.mrb[1].mxu1 }
 0x4b2   :  { %v456_v38 = vpop.eup %455 }
 0x4b3   :  { %333 = vst.msk [vmem:[#allocation2] sm:$0x3] %vm332_vm5, %v456_v38 }
 0x4b4   :  { %490 = shalt.err (!%p487_p12)
}
 0x4b5   :  { %s491_s4 = scalar_lea.hbm %s645_s3, 32 }
 0x4b6   :  { %p492_p13 = scmp.ne.s32.totalorder %s645_s3, %s491_s4  ;;  %p495_p0 = scmp.lt.u32.totalorder %s491_s4, %s645_s3 }
 0x4b8   :  { %p497_p1 = pnand %p495_p0, %p492_p13 }
 0x4ba   :  { %500 = shalt.err (!%p497_p1)
}
 0x4bb   :  { %354 = dma.vmem_to_hbm [thread:$0]  %s352_s1, 32, %s645_s3, [#allocation3]  }
 0x4bc   :  { %501 = dma.done.wait [#allocation3], 32  }
 0x4bd   :  { %502 = vsyncadd [#allocation3], 4294967264 }
 0x4be   :  { %503 = dma.done.wait [#allocation5], 32  }
 0x4bf   :  { %504 = vsyncadd [#allocation5], 4294967264 }
 0x4c0   :  { %371 = vsyncpa [#allocation3], 1 }
 0x4c1   :  { %372 = vsyncpa [#allocation5], 1 }

</bundles_post_ra>
